<compile_context>
chip_gen: v5e
topology: v5e:2x2
jax: 0.10.0
libtpu: 0.0.40
codegen_flags: <defaults>
</compile_context>

<pallas_src>
import jax
import jax.numpy as jnp
from jax.experimental import pallas as pl
from jax.experimental.pallas import tpu as pltpu

INPUT_SIZE = 784
HIDDEN_SIZE = 128
NUM_CLASSES = 10
OUT_PAD = 128            # lane-dense padded logit width
ALIGN = 16               # sublane alignment (bf16 output packs rows in pairs)
DEFAULT_TB_MAX = 2048    # max batch tile: safe on v5e/v6e/v7x VMEM budgets


def _round_up(x, m):
    return (x + m - 1) // m * m


def mlp_kernel(x_ref, w1_ref, b1_ref, w2_ref, b2_ref, o_ref):
    # Cast x to bf16 in-kernel (VPU cast is free in a memory-bound regime);
    # streaming x in its native dtype avoids an extra HBM round-trip.
    x_bf = x_ref[...].astype(jnp.bfloat16)
    # fc1: (TB, 784)bf16 @ (784, 128)bf16 -> f32 accumulation on the MXU.
    h = jnp.dot(x_bf, w1_ref[...], preferred_element_type=jnp.float32)
    h = jnp.maximum(h + b1_ref[...], 0.0)                      # bias + ReLU in f32
    # fc2 (lane-dense, zero-padded to 128 cols): (TB, 128) @ (128, 128).
    out = jnp.dot(h.astype(jnp.bfloat16), w2_ref[...],
                  preferred_element_type=jnp.float32)
    o_ref[...] = (out + b2_ref[...]).astype(o_ref.dtype)       # bf16 store (lane-dense)


def prepare_params(w1, b1, w2, b2):
    """One-time conversion to kernel layout; call once and reuse across forwards.

    w1: (784, 128), b1: (128,), w2: (128, 10), b2: (10,)  (x @ W layout).
    Returns bf16 weights (W2/b2 zero-padded to 128 output cols) and f32 biases.
    """
    w1_bf = w1.astype(jnp.bfloat16)
    b1_2d = b1.reshape(1, HIDDEN_SIZE).astype(jnp.float32)
    w2_p = jnp.zeros((HIDDEN_SIZE, OUT_PAD), jnp.bfloat16)
    w2_p = w2_p.at[:, :NUM_CLASSES].set(w2.astype(jnp.bfloat16))
    b2_p = jnp.zeros((1, OUT_PAD), jnp.float32)
    b2_p = b2_p.at[:, :NUM_CLASSES].set(b2.astype(jnp.float32))
    return w1_bf, b1_2d, w2_p, b2_p


def neural_net_forward(x, w1_bf, b1_2d, w2_p, b2_p, *,
                       tb_max=DEFAULT_TB_MAX, out_dtype=jnp.bfloat16):
    """Forward pass. x: any shape with 784 elems/sample (e.g. (B,1,28,28)).

    Returns (B, 10) logits in `out_dtype` (default bf16; pass jnp.float32 if the
    logits feed an f32 loss and full output precision is required).
    """
    x2d = x.reshape(-1, INPUT_SIZE)
    B = x2d.shape[0]

    # Tile selection: >=2 grid steps when the batch allows (shards the
    # "parallel" axis across both v7x TensorCores); derive TB from B so batch
    # padding waste is bounded by ALIGN-1 rows; cap at tb_max for VMEM.
    min_steps = 2 if B >= 2 * ALIGN else 1
    steps = max(pl.cdiv(B, tb_max), min_steps)
    TB = _round_up(pl.cdiv(B, steps), ALIGN)
    Bp = _round_up(B, TB)
    if Bp != B:
        x2d = jnp.pad(x2d, ((0, Bp - B), (0, 0)))
    grid = (Bp // TB,)

    x_itemsize = jnp.dtype(x2d.dtype).itemsize
    cost = pl.CostEstimate(
        flops=2 * Bp * (INPUT_SIZE * HIDDEN_SIZE + HIDDEN_SIZE * OUT_PAD),
        transcendentals=0,
        bytes_accessed=(Bp * INPUT_SIZE * x_itemsize                 # x
                        + Bp * OUT_PAD * jnp.dtype(out_dtype).itemsize  # logits
                        + INPUT_SIZE * HIDDEN_SIZE * 2               # W1 bf16
                        + HIDDEN_SIZE * OUT_PAD * 2                  # W2 bf16
                        + (HIDDEN_SIZE + OUT_PAD) * 4))              # biases f32

    out = pl.pallas_call(
        mlp_kernel,
        out_shape=jax.ShapeDtypeStruct((Bp, OUT_PAD), out_dtype),
        grid=grid,
        in_specs=[
            pl.BlockSpec((TB, INPUT_SIZE), lambda i: (i, 0)),           # x tile (native dtype)
            pl.BlockSpec((INPUT_SIZE, HIDDEN_SIZE), lambda i: (0, 0)),  # W1 resident
            pl.BlockSpec((1, HIDDEN_SIZE), lambda i: (0, 0)),           # b1 resident
            pl.BlockSpec((HIDDEN_SIZE, OUT_PAD), lambda i: (0, 0)),     # W2 resident
            pl.BlockSpec((1, OUT_PAD), lambda i: (0, 0)),               # b2 resident
        ],
        out_specs=pl.BlockSpec((TB, OUT_PAD), lambda i: (i, 0)),
        compiler_params=pltpu.CompilerParams(
            dimension_semantics=("parallel",),
            vmem_limit_bytes=32 * 1024 * 1024),
        cost_estimate=cost,
    )(x2d, w1_bf, b1_2d, w2_p, b2_p)

    # Tiny (B, 10) slice of the padded bf16 block; fuses with the consumer
    # under jit (no standalone full-array copy).
    return out[:B, :NUM_CLASSES]


def init_params(key):
    """Deterministic init mimicking torch.nn.Linear (uniform +/- 1/sqrt(fan_in)).
    Weights stored as (in_features, out_features) so the kernel computes x @ W."""
    k1, k2, k3, k4 = jax.random.split(key, 4)
    bound1 = 1.0 / jnp.sqrt(INPUT_SIZE)
    bound2 = 1.0 / jnp.sqrt(HIDDEN_SIZE)
    w1 = jax.random.uniform(k1, (INPUT_SIZE, HIDDEN_SIZE), jnp.float32, -bound1, bound1)
    b1 = jax.random.uniform(k2, (HIDDEN_SIZE,), jnp.float32, -bound1, bound1)
    w2 = jax.random.uniform(k3, (HIDDEN_SIZE, NUM_CLASSES), jnp.float32, -bound2, bound2)
    b2 = jax.random.uniform(k4, (NUM_CLASSES,), jnp.float32, -bound2, bound2)
    return w1, b1, w2, b2


if __name__ == "__main__":
    key = jax.random.PRNGKey(0)
    kx, kp = jax.random.split(key)
    # KMNIST-like input: small batch of 8 single-channel 28x28 images (NCHW)
    x = jax.random.normal(kx, (8, 1, 28, 28), jnp.float32)
    w1, b1, w2, b2 = init_params(kp)

    # One-time param prep (hoisted out of the per-call path), then jit the forward.
    params = prepare_params(w1, b1, w2, b2)
    fwd = jax.jit(neural_net_forward)

    out = jax.block_until_ready(fwd(x, *params))

    # Sanity check vs plain-JAX f32 reference (loose tolerance: bf16 operands,
    # f32 MXU accumulation, bf16 output store).
    ref = jnp.maximum(x.reshape(-1, INPUT_SIZE) @ w1 + b1, 0.0) @ w2 + b2
    assert out.shape == (8, NUM_CLASSES)
    assert jnp.allclose(out.astype(jnp.float32), ref, atol=5e-2, rtol=5e-2), (
        float(jnp.max(jnp.abs(out.astype(jnp.float32) - ref))))

    print("KERNEL_OK")
</pallas_src>

<mosaic_0001>
module attributes {stable_mosaic.version = 11 : i64} {
  func.func @mlp_kernel(%arg0: i32, %arg1: memref<16x784xf32, #tpu.memory_space<vmem>>, %arg2: memref<784x128xbf16, #tpu.memory_space<vmem>>, %arg3: memref<1x128xf32, #tpu.memory_space<vmem>>, %arg4: memref<128x128xbf16, #tpu.memory_space<vmem>>, %arg5: memref<1x128xf32, #tpu.memory_space<vmem>>, %arg6: memref<16x128xbf16, #tpu.memory_space<vmem>>) attributes {dimension_semantics = [#tpu.dimension_semantics<parallel>], iteration_bounds = array<i64: 1>, scalar_prefetch = 0 : i64, scratch_operands = 0 : i64, tpu.core_type = #tpu.core_type<tc>, window_params = [{transform_indices = @transform_0, window_bounds = array<i64: 16, 784>}, {pipeline_mode = #tpu.pipeline_mode<synchronous>, transform_indices = @transform_1, window_bounds = array<i64: 784, 128>}, {pipeline_mode = #tpu.pipeline_mode<synchronous>, transform_indices = @transform_2, window_bounds = array<i64: 1, 128>}, {pipeline_mode = #tpu.pipeline_mode<synchronous>, transform_indices = @transform_3, window_bounds = array<i64: 128, 128>}, {pipeline_mode = #tpu.pipeline_mode<synchronous>, transform_indices = @transform_4, window_bounds = array<i64: 1, 128>}, {transform_indices = @transform_5, window_bounds = array<i64: 16, 128>}]} {
    %c0 = arith.constant 0 : index
    %c0_0 = arith.constant 0 : index
    %0 = vector.load %arg1[%c0, %c0_0] : memref<16x784xf32, #tpu.memory_space<vmem>>, vector<16x784xf32>
    %1 = arith.truncf %0 : vector<16x784xf32> to vector<16x784xbf16>
    %c0_1 = arith.constant 0 : index
    %c0_2 = arith.constant 0 : index
    %2 = vector.load %arg2[%c0_1, %c0_2] : memref<784x128xbf16, #tpu.memory_space<vmem>>, vector<784x128xbf16>
    %cst = arith.constant dense<0.000000e+00> : vector<16x128xf32>
    %3 = tpu.matmul %1, %2, %cst {dimension_numbers = #tpu.dot_dimension_numbers<[1], [0], [0], [1], [0, 0, 1, 1], [], []>} : vector<16x784xbf16>, vector<784x128xbf16>, vector<16x128xf32> -> vector<16x128xf32>
    %c0_3 = arith.constant 0 : index
    %c0_4 = arith.constant 0 : index
    %4 = vector.load %arg3[%c0_3, %c0_4] : memref<1x128xf32, #tpu.memory_space<vmem>>, vector<1x128xf32>
    %5 = vector.broadcast %4 : vector<1x128xf32> to vector<16x128xf32>
    %6 = arith.addf %3, %5 : vector<16x128xf32>
    %cst_5 = arith.constant 0.000000e+00 : f32
    %7 = vector.broadcast %cst_5 : f32 to vector<16x128xf32>
    %8 = arith.maximumf %6, %7 : vector<16x128xf32>
    %9 = arith.truncf %8 : vector<16x128xf32> to vector<16x128xbf16>
    %c0_6 = arith.constant 0 : index
    %c0_7 = arith.constant 0 : index
    %10 = vector.load %arg4[%c0_6, %c0_7] : memref<128x128xbf16, #tpu.memory_space<vmem>>, vector<128x128xbf16>
    %cst_8 = arith.constant dense<0.000000e+00> : vector<16x128xf32>
    %11 = tpu.matmul %9, %10, %cst_8 {dimension_numbers = #tpu.dot_dimension_numbers<[1], [0], [0], [1], [0, 0, 1, 1], [], []>} : vector<16x128xbf16>, vector<128x128xbf16>, vector<16x128xf32> -> vector<16x128xf32>
    %c0_9 = arith.constant 0 : index
    %c0_10 = arith.constant 0 : index
    %12 = vector.load %arg5[%c0_9, %c0_10] : memref<1x128xf32, #tpu.memory_space<vmem>>, vector<1x128xf32>
    %13 = vector.broadcast %12 : vector<1x128xf32> to vector<16x128xf32>
    %14 = arith.addf %11, %13 : vector<16x128xf32>
    %15 = arith.truncf %14 : vector<16x128xf32> to vector<16x128xbf16>
    %c0_11 = arith.constant 0 : index
    %c0_12 = arith.constant 0 : index
    %16 = vector.load %arg6[%c0_11, %c0_12] : memref<16x128xbf16, #tpu.memory_space<vmem>>, vector<16x128xbf16>
    tpu.vector_store %arg6[%c0_11, %c0_12], %15 {strides = array<i32>} : memref<16x128xbf16, #tpu.memory_space<vmem>>, vector<16x128xbf16>,
    return
  }
  func.func @transform_0(%arg0: i32) -> (i32, i32) {
    %c0_i32 = arith.constant 0 : i32
    %c0_i32_0 = arith.constant 0 : i32
    return %arg0, %c0_i32 : i32, i32
  }
  func.func @transform_1(%arg0: i32) -> (i32, i32) {
    %c0_i32 = arith.constant 0 : i32
    %c0_i32_0 = arith.constant 0 : i32
    %c0_i32_1 = arith.constant 0 : i32
    return %c0_i32, %c0_i32_0 : i32, i32
  }
  func.func @transform_2(%arg0: i32) -> (i32, i32) {
    %c0_i32 = arith.constant 0 : i32
    %c0_i32_0 = arith.constant 0 : i32
    %c0_i32_1 = arith.constant 0 : i32
    return %c0_i32, %c0_i32_0 : i32, i32
  }
  func.func @transform_3(%arg0: i32) -> (i32, i32) {
    %c0_i32 = arith.constant 0 : i32
    %c0_i32_0 = arith.constant 0 : i32
    %c0_i32_1 = arith.constant 0 : i32
    return %c0_i32, %c0_i32_0 : i32, i32
  }
  func.func @transform_4(%arg0: i32) -> (i32, i32) {
    %c0_i32 = arith.constant 0 : i32
    %c0_i32_0 = arith.constant 0 : i32
    %c0_i32_1 = arith.constant 0 : i32
    return %c0_i32, %c0_i32_0 : i32, i32
  }
  func.func @transform_5(%arg0: i32) -> (i32, i32) {
    %c0_i32 = arith.constant 0 : i32
    %c0_i32_0 = arith.constant 0 : i32
    return %arg0, %c0_i32 : i32, i32
  }
}

</mosaic_0001>

<bundles_post_ra>
// kernel: neural_net_forward.1
= control target key start
LH: loop header
LB: loop body
LE: loop exit
PB: predicated region body
PF: predicated region fallthrough
CT: control target
= control target key end

     0   :  { %vm438_vm0 = vcmask 130048   ;;  %s1178_s1 = inlined_call_operand.vmem [shape: bf16[784,128], index: 1, kind: input, shape index: {}]   ;;  %s1179_s2 = inlined_call_operand.vmem [shape: f32[1,128], index: 2, kind: input, shape index: {}]   ;;  %s1180_s0 = inlined_call_operand.vmem [shape: f32[16,784], index: 0, kind: input, shape index: {}]   ;;  %s1181_s4 = inlined_call_operand.vmem [shape: f32[1,128], index: 4, kind: input, shape index: {}]   ;;  %s1182_s3 = inlined_call_operand.vmem [shape: bf16[128,128], index: 3, kind: input, shape index: {}]   ;;  %s1183_s5 = inlined_call_operand.vmem [shape: bf16[16,128], index: 5, kind: output, shape index: {}]  }
   0x1   :  { %v869_v0 = vld [vmem:[%s1178_s1 + $0x38] sm:$0xff]  ;;  %v868_v4 = vld [vmem:[%s1178_s1 + $0x30] sm:$0xff]  ;;  %v867_v8 = vld [vmem:[%s1178_s1 + $0x28] sm:$0xff] }
   0x2   :  { %v877_v1 = vld [vmem:[%s1178_s1 + $0x78] sm:$0xff]  ;;  %442 = vmatpush.bf16.msra.mxu0 %v869_v0  ;;  %v876_v5 = vld [vmem:[%s1178_s1 + $0x70] sm:$0xff]  ;;  %v875_v9 = vld [vmem:[%s1178_s1 + $0x68] sm:$0xff] }
   0x3   :  { %v885_v2 = vld [vmem:[%s1178_s1 + $0xb8] sm:$0xff]  ;;  %456 = vmatpush.bf16.msra.mxu1 %v877_v1  ;;  %v884_v6 = vld [vmem:[%s1178_s1 + $0xb0] sm:$0xff]  ;;  %v883_v10 = vld [vmem:[%s1178_s1 + $0xa8] sm:$0xff] }
   0x4   :  { %v893_v3 = vld [vmem:[%s1178_s1 + $0xf8] sm:$0xff]  ;;  %470 = vmatpush.bf16.msra.mxu2 %v885_v2  ;;  %v892_v7 = vld [vmem:[%s1178_s1 + $0xf0] sm:$0xff]  ;;  %v891_v11 = vld [vmem:[%s1178_s1 + $0xe8] sm:$0xff] }
   0x5   :  { %484 = vmatpush.bf16.msra.mxu3 %v893_v3  ;;  %v866_v12 = vld [vmem:[%s1178_s1 + $0x20] sm:$0xff]  ;;  %v865_v16 = vld [vmem:[%s1178_s1 + $0x18] sm:$0xff]  ;;  %v864_v20 = vld [vmem:[%s1178_s1 + $0x10] sm:$0xff] }
   0x6   :  { %443 = vmatpush.bf16.msra.mxu0 %v868_v4  ;;  %v874_v13 = vld [vmem:[%s1178_s1 + $0x60] sm:$0xff]  ;;  %v873_v17 = vld [vmem:[%s1178_s1 + $0x58] sm:$0xff]  ;;  %v872_v21 = vld [vmem:[%s1178_s1 + $0x50] sm:$0xff] }
   0x7   :  { %457 = vmatpush.bf16.msra.mxu1 %v876_v5  ;;  %v882_v14 = vld [vmem:[%s1178_s1 + $0xa0] sm:$0xff]  ;;  %v881_v18 = vld [vmem:[%s1178_s1 + $0x98] sm:$0xff]  ;;  %v880_v22 = vld [vmem:[%s1178_s1 + $0x90] sm:$0xff] }
   0x8   :  { %471 = vmatpush.bf16.msra.mxu2 %v884_v6  ;;  %v890_v15 = vld [vmem:[%s1178_s1 + $0xe0] sm:$0xff]  ;;  %v889_v19 = vld [vmem:[%s1178_s1 + $0xd8] sm:$0xff]  ;;  %v888_v23 = vld [vmem:[%s1178_s1 + $0xd0] sm:$0xff] }
   0x9   :  { %485 = vmatpush.bf16.msra.mxu3 %v892_v7  ;;  %v863_v24 = vld [vmem:[%s1178_s1 + $0x8] sm:$0xff]  ;;  %v862_v28 = vld [vmem:[%s1178_s1] sm:$0xff]  ;;  %v28_v31 = vld [vmem:[%s1180_s0 + $0x38] sm:$0xff] }
   0xa   :  { %444 = vmatpush.bf16.msra.mxu0 %v867_v8  ;;  %v871_v25 = vld [vmem:[%s1178_s1 + $0x48] sm:$0xff]  ;;  %v870_v29 = vld [vmem:[%s1178_s1 + $0x40] sm:$0xff]  ;;  %v901_v34 = vld [vmem:[%s1178_s1 + $0x138] sm:$0xff] }
   0xb   :  { %458 = vmatpush.bf16.msra.mxu1 %v875_v9  ;;  %v879_v26 = vld [vmem:[%s1178_s1 + $0x88] sm:$0xff]  ;;  %v21_v30 = vld [vmem:[%s1180_s0] sm:$0xff]  ;;  %v909_v35 = vld [vmem:[%s1178_s1 + $0x178] sm:$0xff] }
   0xc   :  { %472 = vmatpush.bf16.msra.mxu2 %v883_v10  ;;  %v887_v27 = vld [vmem:[%s1178_s1 + $0xc8] sm:$0xff]  ;;  %v29_v33 = vld [vmem:[%s1180_s0 + $0x40] sm:$0xff]  ;;  %v23_v38 = vld [vmem:[%s1180_s0 + $0x10] sm:$0xff]  ;;  %v35_v40 = vpack.c.bf16 %v28_v31, %v21_v30 }
   0xd   :  { %486 = vmatpush.bf16.msra.mxu3 %v891_v11  ;;  %v22_v32 = vld [vmem:[%s1180_s0 + $0x8] sm:$0xff]  ;;  %v878_v36 = vld [vmem:[%s1178_s1 + $0x80] sm:$0xff]  ;;  %v24_v41 = vld [vmem:[%s1180_s0 + $0x18] sm:$0xff] }
   0xe   :  { %445 = vmatpush.bf16.msra.mxu0 %v866_v12  ;;  %v886_v37 = vld [vmem:[%s1178_s1 + $0xc0] sm:$0xff]  ;;  %v30_v39 = vld [vmem:[%s1180_s0 + $0x48] sm:$0xff]  ;;  %v31_v42 = vld [vmem:[%s1180_s0 + $0x50] sm:$0xff]  ;;  %v36_v43 = vpack.c.bf16 %v29_v33, %v22_v32 }
   0xf   :  { %459 = vmatpush.bf16.msra.mxu1 %v874_v13  ;;  %v910_v44 = vld [vmem:[%s1178_s1 + $0x180] sm:$0xff]  ;;  %v900_v45 = vld [vmem:[%s1178_s1 + $0x130] sm:$0xff]  ;;  %v37_v47 = vpack.c.bf16 %v30_v39, %v23_v38  ;;  %v38_v48 = vpack.c.bf16 %v31_v42, %v24_v41  ;;  %v899_v49 = vld [vmem:[%s1178_s1 + $0x128] sm:$0xff] }
  0x10   :  { %473 = vmatpush.bf16.msra.mxu2 %v882_v14  ;;  %v908_v46 = vld [vmem:[%s1178_s1 + $0x170] sm:$0xff]  ;;  %v907_v50 = vld [vmem:[%s1178_s1 + $0x168] sm:$0xff]  ;;  %v898_v51 = vld [vmem:[%s1178_s1 + $0x120] sm:$0xff] }
  0x11   :  { %487 = vmatpush.bf16.msra.mxu3 %v890_v15  ;;  %v906_v52 = vld [vmem:[%s1178_s1 + $0x160] sm:$0xff]  ;;  %v897_v53 = vld [vmem:[%s1178_s1 + $0x118] sm:$0xff]  ;;  %v27_v55 = vld [vmem:[%s1180_s0 + $0x30] sm:$0xff] }
  0x12   :  { %446 = vmatpush.bf16.msra.mxu0 %v865_v16  ;;  %v905_v54 = vld [vmem:[%s1178_s1 + $0x158] sm:$0xff]  ;;  %v34_v56 = vld [vmem:[%s1180_s0 + $0x68] sm:$0xff]  ;;  %v896_v57 = vld [vmem:[%s1178_s1 + $0x110] sm:$0xff] }
  0x13   :  { %460 = vmatpush.bf16.msra.mxu1 %v873_v17  ;;  %v904_v58 = vld [vmem:[%s1178_s1 + $0x150] sm:$0xff]  ;;  %v41_v59 = vpack.c.bf16 %v34_v56, %v27_v55  ;;  %v895_v60 = vld [vmem:[%s1178_s1 + $0x108] sm:$0xff]  ;;  %v894_v62 = vld [vmem:[%s1178_s1 + $0x100] sm:$0xff] }
  0x14   :  { %474 = vmatpush.bf16.msra.mxu2 %v881_v18  ;;  %v903_v61 = vld [vmem:[%s1178_s1 + $0x148] sm:$0xff]  ;;  %v902_v63 = vld [vmem:[%s1178_s1 + $0x140] sm:$0xff]  ;;  %v32_v1 = vld [vmem:[%s1180_s0 + $0x58] sm:$0xff] }
  0x15   :  { %488 = vmatpush.bf16.msra.mxu3 %v889_v19  ;;  %v25_v0 = vld [vmem:[%s1180_s0 + $0x20] sm:$0xff]  ;;  %v26_v2 = vld [vmem:[%s1180_s0 + $0x28] sm:$0xff]  ;;  %v918_v6 = vld [vmem:[%s1182_s3 + $0x38] sm:$0xff] }
  0x16   :  { %447 = vmatpush.bf16.msra.mxu0 %v864_v20  ;;  %v33_v3 = vld [vmem:[%s1180_s0 + $0x60] sm:$0xff]  ;;  %v39_v4 = vpack.c.bf16 %v32_v1, %v25_v0  ;;  %v917_v7 = vld [vmem:[%s1182_s3 + $0x30] sm:$0xff]  ;;  %v916_v8 = vld [vmem:[%s1182_s3 + $0x28] sm:$0xff] }
  0x17   :  { %461 = vmatpush.bf16.msra.mxu1 %v872_v21  ;;  %v40_v5 = vpack.c.bf16 %v33_v3, %v26_v2  ;;  %v915_v9 = vld [vmem:[%s1182_s3 + $0x20] sm:$0xff]  ;;  %v914_v10 = vld [vmem:[%s1182_s3 + $0x18] sm:$0xff]  ;;  %v913_v11 = vld [vmem:[%s1182_s3 + $0x10] sm:$0xff] }
  0x18   :  { %475 = vmatpush.bf16.msra.mxu2 %v880_v22  ;;  %v912_v12 = vld [vmem:[%s1182_s3 + $0x8] sm:$0xff]  ;;  %v911_v16 = vld [vmem:[%s1182_s3] sm:$0xff] }
  0x19   :  { %489 = vmatpush.bf16.msra.mxu3 %v888_v23  ;;  %v924_v17 = vld [vmem:[%s1179_s2] ss:$0 sm:$0xff] }
  0x1a   :  { %448 = vmatpush.bf16.msra.mxu0 %v863_v24 }
  0x1b   :  { %462 = vmatpush.bf16.msra.mxu1 %v871_v25 }
  0x1c   :  { %476 = vmatpush.bf16.msra.mxu2 %v879_v26 }
  0x1d   :  { %490 = vmatpush.bf16.msra.mxu3 %v887_v27 }
  0x1e   :  { %449 = vmatpush.bf16.msra.mxu0 %v862_v28 }
  0x1f   :  { %463 = vmatpush.bf16.msra.mxu1 %v870_v29 }
  0x20   :  { %477 = vmatpush.bf16.msra.mxu2 %v878_v36 }
  0x21   :  { %491 = vmatpush.bf16.msra.mxu3 %v886_v37  ;;  %450 = vmatmul.bf16.vlgmr.msra.gmra.mxu0 %v35_v40 }
  0x22   :  { %498 = vmatpush.bf16.msrb.mxu0 %v901_v34  ;;  %464 = vmatmul.bf16.vlgmr.msra.gmra.mxu1 %v36_v43 }
  0x23   :  { %512 = vmatpush.bf16.msrb.mxu1 %v909_v35  ;;  %478 = vmatmul.bf16.vlgmr.msra.gmra.mxu2 %v37_v47  ;;  %v925_v47 = vld [vmem:[%s1181_s4] ss:$0 sm:$0xff] }
  0x24   :  { %533 = vmatpush.bf16.msrb.mxu2 %v910_v44  ;;  %492 = vmatmul.bf16.vlgmr.msra.gmra.mxu3 %v38_v48 }
  0x25   :  { %611 = vmatpush.bf16.msrb.mxu3 %v918_v6 }
  0x26   :  { %499 = vmatpush.bf16.msrb.mxu0 %v900_v45 }
  0x27   :  { %513 = vmatpush.bf16.msrb.mxu1 %v908_v46 }
  0x29   :  { %612 = vmatpush.bf16.msrb.mxu3 %v917_v7 }
  0x2a   :  { %500 = vmatpush.bf16.msrb.mxu0 %v899_v49 }
  0x2b   :  { %514 = vmatpush.bf16.msrb.mxu1 %v907_v50 }
  0x2d   :  { %613 = vmatpush.bf16.msrb.mxu3 %v916_v8 }
  0x2e   :  { %501 = vmatpush.bf16.msrb.mxu0 %v898_v51 }
  0x2f   :  { %515 = vmatpush.bf16.msrb.mxu1 %v906_v52 }
  0x31   :  { %614 = vmatpush.bf16.msrb.mxu3 %v915_v9 }
  0x32   :  { %502 = vmatpush.bf16.msrb.mxu0 %v897_v53 }
  0x33   :  { %516 = vmatpush.bf16.msrb.mxu1 %v905_v54  ;;  %829 = vmatmul.msk.bf16.vlgmr.msrb.gmra.mxu2 %vm438_vm0, %v41_v59 }
  0x35   :  { %615 = vmatpush.bf16.msrb.mxu3 %v914_v10 }
  0x36   :  { %503 = vmatpush.bf16.msrb.mxu0 %v896_v57 }
  0x37   :  { %517 = vmatpush.bf16.msrb.mxu1 %v904_v58 }
  0x39   :  { %616 = vmatpush.bf16.msrb.mxu3 %v913_v11 }
  0x3a   :  { %504 = vmatpush.bf16.msrb.mxu0 %v895_v60 }
  0x3b   :  { %518 = vmatpush.bf16.msrb.mxu1 %v903_v61 }
  0x3d   :  { %617 = vmatpush.bf16.msrb.mxu3 %v912_v12 }
  0x3e   :  { %505 = vmatpush.bf16.msrb.mxu0 %v894_v62 }
  0x3f   :  { %519 = vmatpush.bf16.msrb.mxu1 %v902_v63 }
  0x41   :  { %506 = vmatmul.bf16.vlgmr.msrb.gmra.mxu0 %v39_v4  ;;  %618 = vmatpush.bf16.msrb.mxu3 %v911_v16 }
  0x42   :  { %520 = vmatmul.bf16.vlgmr.msrb.gmra.mxu1 %v40_v5 }
  0x9e   :  { %v451_v13 = vpop.f32.mrf.mxu0 }
  0x9f   :  { %v465_v14 = vpop.f32.mrf.mxu1  ;;  %v452_v18 = vadd.f32 %v924_v17, %v451_v13 }
  0xa1   :  { %v466_v22 = vadd.f32 %v465_v14, %v452_v18 }
  0xa6   :  { %v479_v15 = vpop.f32.mrf.mxu2  ;;  %v453_v19 = vpop.f32.mrf.mxu0 }
  0xa7   :  { %v467_v20 = vpop.f32.mrf.mxu1  ;;  %v493_v23 = vpop.f32.mrf.mxu3  ;;  %v454_v24 = vadd.f32 %v924_v17, %v453_v19  ;;  %v480_v25 = vadd.f32 %v479_v15, %v466_v22 }
  0xa9   :  { %v468_v26 = vadd.f32 %v467_v20, %v454_v24  ;;  %v494_v29 = vadd.f32 %v493_v23, %v480_v25 }
  0xae   :  { %v481_v21 = vpop.f32.mrf.mxu2 }
  0xaf   :  { %v482_v31 = vadd.f32 %v481_v21, %v468_v26  ;;  %v495_v33 = vpop.f32.mrf.mxu3 }
  0xb1   :  { %v496_v34 = vadd.f32 %v495_v33, %v482_v31 }
  0xb6   :  { %v535_v30 = vpop.f32.mrf.mxu2 }
  0xbe   :  { %v507_v27 = vpop.f32.mrf.mxu0  ;;  %v537_v41 = vpop.f32.mrf.mxu2 }
  0xbf   :  { %v521_v28 = vpop.f32.mrf.mxu1  ;;  %v508_v32 = vadd.f32 %v507_v27, %v494_v29 }
  0xc1   :  { %v522_v35 = vadd.f32 %v521_v28, %v508_v32 }
  0xc3   :  { %v536_v39 = vadd.f32 %v535_v30, %v522_v35 }
  0xc5   :  { %v540_v43 = vmax.f32 %v536_v39, 0.0 }
  0xc6   :  { %v509_v36 = vpop.f32.mrf.mxu0 }
  0xc7   :  { %v510_v37 = vadd.f32 %v509_v36, %v496_v34  ;;  %v523_v38 = vpop.f32.mrf.mxu1 }
  0xc9   :  { %v524_v40 = vadd.f32 %v523_v38, %v510_v37 }
  0xcb   :  { %v538_v42 = vadd.f32 %v537_v41, %v524_v40 }
  0xcd   :  { %v541_v44 = vmax.f32 %v538_v42, 0.0 }
  0xcf   :  { %v542_v45 = vpack.c.bf16 %v541_v44, %v540_v43 }
  0xd1   :  { %619 = vmatmul.bf16.vlgmr.msrb.gmra.mxu3 %v542_v45 }
 0x154   :  { %v620_v46 = vpop.f32.mrf.mxu3 }
 0x155   :  { %v621_v49 = vadd.f32 %v925_v47, %v620_v46 }
 0x15c   :  { %v622_v48 = vpop.f32.mrf.mxu3 }
 0x15d   :  { %v623_v50 = vadd.f32 %v925_v47, %v622_v48 }
 0x15f   :  { %v922_v51 = vpack.c.bf16 %v623_v50, %v621_v49 }
 0x161   :  { %923 = vst [vmem:[%s1183_s5] sm:$0xff] %v922_v51  }

</bundles_post_ra>
